<compile_context>
chip_gen: v7x
topology: tpu7x:2x2x1
jax: 0.10.0
libtpu: 0.0.40
codegen_flags: <defaults>
</compile_context>

<pallas_src>
import jax
import jax.numpy as jnp
from jax.experimental import pallas as pl
from jax.experimental.pallas import tpu as pltpu

_LANE = 512          # lane-dense last dim (multiple of 128)
_TILE_ROWS = 512     # 512 x 512 x 4B = 1 MiB per f32 tile (x2 in + x2 out buffers = 4 MiB live)


def _relu_kernel(x_ref, o_ref):
    # Pure elementwise max(x, 0) on the whole VMEM tile (VPU op).
    o_ref[...] = jnp.maximum(x_ref[...], jnp.zeros((), x_ref.dtype))


def _relu_pallas_impl(x: jax.Array) -> jax.Array:
    """ReLU over an arbitrary-shape tensor via a tiled, pipelined Pallas TPU kernel."""
    orig_shape = x.shape
    flat = x.reshape(-1)
    n = flat.shape[0]

    # Rows needed at _LANE lanes per row.
    rows = pl.cdiv(n, _LANE)
    if rows <= _TILE_ROWS:
        # Small input: one tile; round rows up to the sublane multiple (8).
        tile_rows = max(8, ((rows + 7) // 8) * 8)
        rows_padded = tile_rows
    else:
        # Large input: fixed ~1 MiB tiles; round rows up to a tile multiple.
        tile_rows = _TILE_ROWS
        rows_padded = ((rows + _TILE_ROWS - 1) // _TILE_ROWS) * _TILE_ROWS

    padded_elems = rows_padded * _LANE
    pad = padded_elems - n
    if pad:
        flat = jnp.pad(flat, (0, pad))
    x2d = flat.reshape(rows_padded, _LANE)

    grid = (rows_padded // tile_rows,)

    out2d = pl.pallas_call(
        _relu_kernel,
        out_shape=jax.ShapeDtypeStruct(x2d.shape, x2d.dtype),
        grid=grid,
        in_specs=[pl.BlockSpec((tile_rows, _LANE), lambda i: (i, 0))],
        out_specs=pl.BlockSpec((tile_rows, _LANE), lambda i: (i, 0)),
        # inplace=True semantics: reuse the (intermediate, padded) input buffer.
        input_output_aliases={0: 0},
        compiler_params=pltpu.CompilerParams(
            dimension_semantics=("parallel",),
        ),
    )(x2d)

    out = out2d.reshape(-1)
    if pad:
        out = out[:n]
    return out.reshape(orig_shape)


# jit the wrapper so pad/reshape fuse and the aliased input is an internal buffer.
relu_pallas = jax.jit(_relu_pallas_impl)

# TODO(synk): if this ReLU follows a conv/matmul in the real model, fuse it as an
# epilogue of that producer kernel instead of a standalone pallas_call.


if __name__ == "__main__":
    key = jax.random.PRNGKey(0)
    # Small NCHW input consistent with the module's forward (original was
    # [1, 336, 28, 28]; reduced synthetic shape for the test).
    x = jax.random.normal(key, (2, 4, 16, 16), dtype=jnp.float32)

    y = relu_pallas(x)
    jax.block_until_ready(y)

    # Correctness check against plain JAX.
    y_ref = jnp.maximum(x, 0.0)
    assert y.shape == x.shape and y.dtype == x.dtype
    assert jnp.array_equal(y, y_ref)

    # Also exercise the multi-tile (gridded) path with a larger tensor.
    x_big = jax.random.normal(jax.random.PRNGKey(1), (1, 336, 28, 28), dtype=jnp.float32)
    y_big = relu_pallas(x_big)
    jax.block_until_ready(y_big)
    assert jnp.array_equal(y_big, jnp.maximum(x_big, 0.0))

    print("KERNEL_OK")
</pallas_src>

<mosaic_0001>
module attributes {stable_mosaic.version = 11 : i64} {
  func.func @_relu_kernel(%arg0: i32, %arg1: memref<8x512xf32, #tpu.memory_space<vmem>>, %arg2: memref<8x512xf32, #tpu.memory_space<vmem>>) attributes {dimension_semantics = [#tpu.dimension_semantics<parallel>], iteration_bounds = array<i64: 1>, scalar_prefetch = 0 : i64, scratch_operands = 0 : i64, tpu.core_type = #tpu.core_type<tc>, window_params = [{transform_indices = @transform_0, window_bounds = array<i64: 8, 512>}, {transform_indices = @transform_1, window_bounds = array<i64: 8, 512>}]} {
    %c0 = arith.constant 0 : index
    %c0_0 = arith.constant 0 : index
    %0 = vector.load %arg1[%c0, %c0_0] : memref<8x512xf32, #tpu.memory_space<vmem>>, vector<8x512xf32>
    %cst = arith.constant 0.000000e+00 : f32
    %1 = vector.broadcast %cst : f32 to vector<8x512xf32>
    %2 = arith.maximumf %0, %1 : vector<8x512xf32>
    %c0_1 = arith.constant 0 : index
    %c0_2 = arith.constant 0 : index
    %3 = vector.load %arg2[%c0_1, %c0_2] : memref<8x512xf32, #tpu.memory_space<vmem>>, vector<8x512xf32>
    tpu.vector_store %arg2[%c0_1, %c0_2], %2 {strides = array<i32>} : memref<8x512xf32, #tpu.memory_space<vmem>>, vector<8x512xf32>,
    return
  }
  func.func @transform_0(%arg0: i32) -> (i32, i32) {
    %c0_i32 = arith.constant 0 : i32
    %c0_i32_0 = arith.constant 0 : i32
    return %arg0, %c0_i32 : i32, i32
  }
  func.func @transform_1(%arg0: i32) -> (i32, i32) {
    %c0_i32 = arith.constant 0 : i32
    %c0_i32_0 = arith.constant 0 : i32
    return %arg0, %c0_i32 : i32, i32
  }
}

</mosaic_0001>

<bundles_post_ra>
// kernel: _relu_pallas_impl.1
= control target key start
LH: loop header
LB: loop body
LE: loop exit
PB: predicated region body
PF: predicated region fallthrough
CT: control target
= control target key end

     0   :  { %s58_s0 = inlined_call_operand.vmem [shape: f32[8,512], index: 0, kind: input, shape index: {}, may-alias: {0,1}]   ;;  %s59_s1 = inlined_call_operand.vmem [shape: f32[8,512], index: 1, kind: output, shape index: {}, may-alias: {0,1}]  }
   0x1   :  { %v8_v0 = vld [vmem:[%s58_s0] sm:$0xff]  ;;  %v9_v1 = vld [vmem:[%s58_s0 + $0x8] sm:$0xff]  ;;  %v10_v2 = vld [vmem:[%s58_s0 + $0x10] sm:$0xff] }
   0x2   :  { %v12_v3 = vmax.f32 %v8_v0, 0.0  ;;  %v13_v4 = vmax.f32 %v9_v1, 0.0  ;;  %v14_v5 = vmax.f32 %v10_v2, 0.0  ;;  %v11_v6 = vld [vmem:[%s58_s0 + $0x18] sm:$0xff] }
   0x3   :  { %v15_v7 = vmax.f32 %v11_v6, 0.0 }
   0x4   :  { %16 = vst [vmem:[%s59_s1] sm:$0xff] %v12_v3  ;;  %17 = vst [vmem:[%s59_s1 + $0x8] sm:$0xff] %v13_v4 }
   0x5   :  { %18 = vst [vmem:[%s59_s1 + $0x10] sm:$0xff] %v14_v5  ;;  %19 = vst [vmem:[%s59_s1 + $0x18] sm:$0xff] %v15_v7 }

</bundles_post_ra>
